<compile_context>
chip_gen: v6e
topology: v6e:2x2x1
jax: 0.10.0
libtpu: 0.0.40
codegen_flags: <defaults>
</compile_context>

<pallas_src>
import jax
import jax.numpy as jnp
from jax import lax
from jax.experimental import pallas as pl
from jax.experimental.pallas import tpu as pltpu


def _round_up(n, m):
    return ((n + m - 1) // m) * m


# ----------------------------------------------------------------------------
# Single-step kernel: one fused matmul for the recurrence, one for the decoder.
# ----------------------------------------------------------------------------
def _rnn_step_kernel(hx_ref, w1_ref, wb_ref, y_ref, h_out_ref):
    # pre = [h | x] @ [R | A]^T   (contract last dims -> no transpose needed)
    pre = lax.dot_general(
        hx_ref[...], w1_ref[...],
        dimension_numbers=(((1,), (1,)), ((), ())),
        preferred_element_type=jnp.float32)
    h_new = jnp.tanh(pre)                       # f32 EUP tanh
    h_out_ref[...] = h_new.astype(h_out_ref.dtype)

    # y = h_new @ B^T
    y = lax.dot_general(
        h_new, wb_ref[...],
        dimension_numbers=(((1,), (1,)), ((), ())),
        preferred_element_type=jnp.float32)
    y_ref[...] = y.astype(y_ref.dtype)


def vanilla_rnn_forward(x, h, a_w, r_w, b_w):
    """One RNN step (matches VanillaRNN.forward). Returns (y, h_update)."""
    batch, in_out = x.shape
    hidden = h.shape[1]
    dtype = x.dtype

    b_p = _round_up(max(batch, 1), 8)           # sublane-aligned batch
    h_pd = _round_up(hidden, 128)               # lane-dense hidden
    d_pd = _round_up(in_out, 128)               # lane-dense in/out

    # One pad per operand + one concatenate (cheaper than zeros().at[].set()
    # chains). For repeated stepping use vanilla_rnn_sequence_forward, which
    # pads the weights exactly once and keeps them resident in VMEM.
    h_pad = jnp.pad(h, ((0, b_p - batch), (0, h_pd - hidden)))
    x_pad = jnp.pad(x, ((0, b_p - batch), (0, d_pd - in_out)))
    hx = jnp.concatenate([h_pad, x_pad], axis=1)                       # [h | x]
    w1 = jnp.concatenate(
        [jnp.pad(r_w, ((0, h_pd - hidden), (0, h_pd - hidden))),
         jnp.pad(a_w, ((0, h_pd - hidden), (0, d_pd - in_out)))],
        axis=1)                                                        # [R | A]
    wb = jnp.pad(b_w, ((0, d_pd - in_out), (0, h_pd - hidden)))

    full = lambda shape: pl.BlockSpec(shape, lambda: (0,) * len(shape))
    y_p, h_new_p = pl.pallas_call(
        _rnn_step_kernel,
        out_shape=(jax.ShapeDtypeStruct((b_p, d_pd), dtype),
                   jax.ShapeDtypeStruct((b_p, h_pd), dtype)),
        in_specs=[full(hx.shape), full(w1.shape), full(wb.shape)],
        out_specs=(full((b_p, d_pd)), full((b_p, h_pd))),
    )(hx, w1, wb)

    return y_p[:batch, :in_out], h_new_p[:batch, :hidden]


# ----------------------------------------------------------------------------
# Sequence-fused path:
#   kernel 1 (parallel): xa[t] = x[t] @ A^T   (bulk, h-independent, tiled)
#   kernel 2 (arbitrary): chunked recurrence h @ R^T + xa -> tanh, with the
#                         decoder B fused at chunk granularity.
# ----------------------------------------------------------------------------
def vanilla_rnn_sequence_forward(xs, h0, a_w, r_w, b_w, *, t_blk=64):
    """Repeated application of VanillaRNN.forward over xs: (seq, batch, in_out).

    Returns (ys: (seq, batch, in_out), h_final: (batch, hidden)).
    """
    seq, batch, in_out = xs.shape
    hidden = h0.shape[1]
    dtype = xs.dtype
    itemsize = jnp.dtype(dtype).itemsize

    b_p = _round_up(max(batch, 1), 8)
    h_pd = _round_up(hidden, 128)
    d_pd = _round_up(in_out, 128)

    t_blk = max(1, min(t_blk, seq))             # timestep chunk per grid step
    seq_p = _round_up(seq, t_blk)
    n_chunks = seq_p // t_blk
    needs_mask = seq_p != seq                   # padded (bogus) trailing steps
    unroll = t_blk if t_blk <= 8 else 8

    # Pad everything once (zero padding contributes nothing to the dots).
    xs_p = jnp.pad(xs, ((0, seq_p - seq), (0, b_p - batch), (0, d_pd - in_out)))
    h0_p = jnp.pad(h0, ((0, b_p - batch), (0, h_pd - hidden)))
    r_p = jnp.pad(r_w, ((0, h_pd - hidden), (0, h_pd - hidden)))
    a_p = jnp.pad(a_w, ((0, h_pd - hidden), (0, d_pd - in_out)))
    wb_p = jnp.pad(b_w, ((0, d_pd - in_out), (0, h_pd - hidden)))

    # ---------------- kernel 1: xa = x @ A^T, hoisted off the serial path ----
    def xa_kernel(x_ref, a_ref, o_ref):
        x2 = x_ref[...].reshape(t_blk * b_p, d_pd)
        xa = lax.dot_general(
            x2, a_ref[...],
            dimension_numbers=(((1,), (1,)), ((), ())),
            preferred_element_type=jnp.float32)
        o_ref[...] = xa.reshape(t_blk, b_p, h_pd).astype(o_ref.dtype)

    xa_vmem = itemsize * (2 * t_blk * b_p * (d_pd + h_pd) + 2 * h_pd * d_pd)
    xa_p = pl.pallas_call(
        xa_kernel,
        out_shape=jax.ShapeDtypeStruct((seq_p, b_p, h_pd), dtype),
        grid_spec=pltpu.PrefetchScalarGridSpec(
            num_scalar_prefetch=0,
            grid=(n_chunks,),
            in_specs=[
                pl.BlockSpec((t_blk, b_p, d_pd), lambda c: (c, 0, 0)),  # x chunk
                pl.BlockSpec((h_pd, d_pd), lambda c: (0, 0)),           # A (res.)
            ],
            out_specs=pl.BlockSpec((t_blk, b_p, h_pd), lambda c: (c, 0, 0)),
        ),
        compiler_params=pltpu.CompilerParams(
            dimension_semantics=("parallel",),
            vmem_limit_bytes=min(int(xa_vmem * 2) + (2 << 20), 96 << 20)),
    )(xs_p, a_p)

    # ---------------- kernel 2: chunked recurrence + fused decoder -----------
    def rnn_kernel(xa_ref, h0_ref, r_ref, wb_ref, y_ref, h_last_ref,
                   h_carry, h_chunk):
        c = pl.program_id(0)

        @pl.when(c == 0)
        def _():
            h_carry[...] = h0_ref[...].astype(jnp.float32)

        def step(i, h):
            # Serial critical path per step: one K=h_pd MXU matmul + EUP tanh.
            pre = lax.dot_general(
                h, r_ref[...],
                dimension_numbers=(((1,), (1,)), ((), ())),
                preferred_element_type=jnp.float32)
            pre = pre + xa_ref[i].astype(jnp.float32)
            h_new = jnp.tanh(pre)
            if needs_mask:
                valid = (c * t_blk + i) < seq    # freeze h on padded steps
                h_new = jnp.where(valid, h_new, h)
            h_chunk[i] = h_new
            return h_new

        h_fin = lax.fori_loop(0, t_blk, step, h_carry[...], unroll=unroll)
        h_carry[...] = h_fin
        h_last_ref[...] = h_fin.astype(h_last_ref.dtype)

        # Chunk-level decoder: one lane-dense matmul against resident B;
        # h_chunk never leaves VMEM.
        hc = h_chunk[...].reshape(t_blk * b_p, h_pd)
        y = lax.dot_general(
            hc, wb_ref[...],
            dimension_numbers=(((1,), (1,)), ((), ())),
            preferred_element_type=jnp.float32)
        y_ref[...] = y.reshape(t_blk, b_p, d_pd).astype(y_ref.dtype)

    rec_vmem = (
        2 * t_blk * b_p * h_pd * itemsize            # xa chunk (double-buffered)
        + 2 * t_blk * b_p * d_pd * itemsize          # y chunk (double-buffered)
        + 2 * (b_p * h_pd + h_pd * h_pd + d_pd * h_pd) * itemsize  # h0, R, B
        + (t_blk * b_p * h_pd + b_p * h_pd) * 4      # scratch: h_chunk + h_carry
        + 2 * b_p * h_pd * itemsize                  # h_last
    )
    rec_limit = min(int(rec_vmem * 2) + (2 << 20), 96 << 20)

    ys_p, h_last_p = pl.pallas_call(
        rnn_kernel,
        out_shape=(jax.ShapeDtypeStruct((seq_p, b_p, d_pd), dtype),
                   jax.ShapeDtypeStruct((b_p, h_pd), dtype)),
        grid_spec=pltpu.PrefetchScalarGridSpec(
            num_scalar_prefetch=0,
            grid=(n_chunks,),
            in_specs=[
                pl.BlockSpec((t_blk, b_p, h_pd), lambda c: (c, 0, 0)),  # xa chunk
                pl.BlockSpec((b_p, h_pd), lambda c: (0, 0)),            # h0 (res.)
                pl.BlockSpec((h_pd, h_pd), lambda c: (0, 0)),           # R  (res.)
                pl.BlockSpec((d_pd, h_pd), lambda c: (0, 0)),           # B  (res.)
            ],
            out_specs=(
                pl.BlockSpec((t_blk, b_p, d_pd), lambda c: (c, 0, 0)),  # y chunk
                pl.BlockSpec((b_p, h_pd), lambda c: (0, 0)),            # final h
            ),
            scratch_shapes=[
                pltpu.VMEM((b_p, h_pd), jnp.float32),          # carried h
                pltpu.VMEM((t_blk, b_p, h_pd), jnp.float32),   # chunk h states
            ]),
        compiler_params=pltpu.CompilerParams(
            dimension_semantics=("arbitrary",),
            vmem_limit_bytes=rec_limit),
    )(xa_p, h0_p, r_p, wb_p)

    ys = ys_p[:seq, :batch, :in_out]
    h_last = h_last_p[:batch, :hidden]
    return ys, h_last


# ----------------------------------------------------------------------------
# Pure-JAX references
# ----------------------------------------------------------------------------
def _reference_step(x, h, a_w, r_w, b_w):
    h_new = jnp.tanh(h @ r_w.T + x @ a_w.T)
    return h_new @ b_w.T, h_new


def _reference_sequence(xs, h0, a_w, r_w, b_w):
    h = h0
    ys = []
    for t in range(xs.shape[0]):
        y, h = _reference_step(xs[t], h, a_w, r_w, b_w)
        ys.append(y)
    return jnp.stack(ys, axis=0), h


if __name__ == "__main__":
    in_out_size = 75        # len(all_letters) in the original module
    hidden_size = 32
    batch = 2
    seq_len = 8

    key = jax.random.PRNGKey(0)
    kx, kh, ka, kr, kb, ks, ks2 = jax.random.split(key, 7)

    def linear_init(k, out_f, in_f):
        bound = 1.0 / jnp.sqrt(jnp.float32(in_f))
        return jax.random.uniform(k, (out_f, in_f), jnp.float32, -bound, bound)

    A_w = linear_init(ka, hidden_size, in_out_size)   # encoder A: (hidden, in_out)
    R_w = linear_init(kr, hidden_size, hidden_size)   # recurrent R: (hidden, hidden)
    B_w = linear_init(kb, in_out_size, hidden_size)   # decoder B: (in_out, hidden)

    x = jax.random.normal(kx, (batch, in_out_size), jnp.float32)
    h = jax.random.normal(kh, (batch, hidden_size), jnp.float32)
    xs = jax.random.normal(ks, (seq_len, batch, in_out_size), jnp.float32)

    # --- single step (exactly VanillaRNN.forward) ---
    y, h_new = vanilla_rnn_forward(x, h, A_w, R_w, B_w)
    jax.block_until_ready((y, h_new))
    y_ref, h_ref = _reference_step(x, h, A_w, R_w, B_w)
    assert y.shape == (batch, in_out_size)
    assert h_new.shape == (batch, hidden_size)
    assert jnp.allclose(y, y_ref, atol=1e-4, rtol=1e-4)
    assert jnp.allclose(h_new, h_ref, atol=1e-4, rtol=1e-4)

    # --- sequence-fused version (xa hoisted, chunked recurrence, fused B) ---
    ys, h_last = vanilla_rnn_sequence_forward(xs, h, A_w, R_w, B_w)
    jax.block_until_ready((ys, h_last))
    ys_ref, h_last_ref = _reference_sequence(xs, h, A_w, R_w, B_w)
    assert ys.shape == (seq_len, batch, in_out_size)
    assert h_last.shape == (batch, hidden_size)
    assert jnp.allclose(ys, ys_ref, atol=1e-4, rtol=1e-4)
    assert jnp.allclose(h_last, h_last_ref, atol=1e-4, rtol=1e-4)

    # --- ragged sequence: exercises multi-chunk grid + padded-step masking ---
    seq_len2 = 11
    xs2 = jax.random.normal(ks2, (seq_len2, batch, in_out_size), jnp.float32)
    ys2, h_last2 = vanilla_rnn_sequence_forward(xs2, h, A_w, R_w, B_w, t_blk=4)
    jax.block_until_ready((ys2, h_last2))
    ys2_ref, h_last2_ref = _reference_sequence(xs2, h, A_w, R_w, B_w)
    assert jnp.allclose(ys2, ys2_ref, atol=1e-4, rtol=1e-4)
    assert jnp.allclose(h_last2, h_last2_ref, atol=1e-4, rtol=1e-4)

    print("KERNEL_OK")
</pallas_src>

<mosaic_0001>
module attributes {stable_mosaic.version = 11 : i64} {
  func.func @_rnn_step_kernel(%arg0: memref<8x256xf32, #tpu.memory_space<vmem>>, %arg1: memref<128x256xf32, #tpu.memory_space<vmem>>, %arg2: memref<128x128xf32, #tpu.memory_space<vmem>>, %arg3: memref<8x128xf32, #tpu.memory_space<vmem>>, %arg4: memref<8x128xf32, #tpu.memory_space<vmem>>) attributes {dimension_semantics = [], scalar_prefetch = 0 : i64, scratch_operands = 0 : i64, tpu.core_type = #tpu.core_type<tc>} {
    %c0 = arith.constant 0 : index
    %c0_0 = arith.constant 0 : index
    %0 = vector.load %arg0[%c0, %c0_0] : memref<8x256xf32, #tpu.memory_space<vmem>>, vector<8x256xf32>
    %c0_1 = arith.constant 0 : index
    %c0_2 = arith.constant 0 : index
    %1 = vector.load %arg1[%c0_1, %c0_2] : memref<128x256xf32, #tpu.memory_space<vmem>>, vector<128x256xf32>
    %cst = arith.constant dense<0.000000e+00> : vector<8x128xf32>
    %2 = tpu.matmul %0, %1, %cst {dimension_numbers = #tpu.dot_dimension_numbers<[1], [1], [0], [0], [0, 0, 1, 0], [], []>} : vector<8x256xf32>, vector<128x256xf32>, vector<8x128xf32> -> vector<8x128xf32>
    %3 = math.tanh %2 : vector<8x128xf32>
    %c0_3 = arith.constant 0 : index
    %c0_4 = arith.constant 0 : index
    %4 = vector.load %arg4[%c0_3, %c0_4] : memref<8x128xf32, #tpu.memory_space<vmem>>, vector<8x128xf32>
    tpu.vector_store %arg4[%c0_3, %c0_4], %3 {strides = array<i32>} : memref<8x128xf32, #tpu.memory_space<vmem>>, vector<8x128xf32>,
    %c0_5 = arith.constant 0 : index
    %c0_6 = arith.constant 0 : index
    %5 = vector.load %arg2[%c0_5, %c0_6] : memref<128x128xf32, #tpu.memory_space<vmem>>, vector<128x128xf32>
    %cst_7 = arith.constant dense<0.000000e+00> : vector<8x128xf32>
    %6 = tpu.matmul %3, %5, %cst_7 {dimension_numbers = #tpu.dot_dimension_numbers<[1], [1], [0], [0], [0, 0, 1, 0], [], []>} : vector<8x128xf32>, vector<128x128xf32>, vector<8x128xf32> -> vector<8x128xf32>
    %c0_8 = arith.constant 0 : index
    %c0_9 = arith.constant 0 : index
    %7 = vector.load %arg3[%c0_8, %c0_9] : memref<8x128xf32, #tpu.memory_space<vmem>>, vector<8x128xf32>
    tpu.vector_store %arg3[%c0_8, %c0_9], %6 {strides = array<i32>} : memref<8x128xf32, #tpu.memory_space<vmem>>, vector<8x128xf32>,
    return
  }
}

</mosaic_0001>

<bundles_post_ra>
// kernel: tpu_custom_call.1
= control target key start
LH: loop header
LB: loop body
LE: loop exit
PB: predicated region body
PF: predicated region fallthrough
CT: control target
= control target key end

     0   :  { %10 = vsyncpa [#allocation3], 0  ;;  %s521_s0 = inlined_call_operand.hbm [shape: f32[8,256], index: 0, kind: input, shape index: {}]   ;;  %s522_s1 = inlined_call_operand.hbm [shape: f32[128,256], index: 1, kind: input, shape index: {}]   ;;  %s523_s2 = inlined_call_operand.hbm [shape: f32[128,128], index: 2, kind: input, shape index: {}]   ;;  %s524_s3 = inlined_call_operand.hbm [shape: f32[8,128], index: 3, kind: output, shape index: {0}]   ;;  %s525_s4 = inlined_call_operand.hbm [shape: f32[8,128], index: 4, kind: output, shape index: {1}]  }
   0x1   :  { %11 = vsyncpa [#allocation6], 0 }
   0x2   :  { %12 = vsyncpa [#allocation4], 0 }
   0x3   :  { %13 = vsyncpa [#allocation10], 0  ;;  %s453_s15 = smov [#allocation5]  }
   0x4   :  { %s29_s16 = sshll.u32 %s453_s15, 4  ;;  %s30_s16 = int_to_ptr.vmem [resolvable:$true] %s29_s16 }
   0x5   :  { %s353_s17 = scalar_lea.vmem %s30_s16, 4096  ;;  %p358_p1 = scmp.lt.s32.totalorder %s30_s16, %s30_s16 }
   0x6   :  { %p354_p0 = scmp.ne.s32.totalorder %s30_s16, %s353_s17  ;;  %p359_p2 = scmp.lt.s32.totalorder %s353_s17, %s353_s17 }
   0x8   :  { %p360_p3 = por %p359_p2, %p358_p1 }
   0xa   :  { %p361_p4 = pnand %p360_p3, %p354_p0 }
   0xc   :  { %364 = shalt.err (!%p361_p4)
}
   0xd   :  { %s454_s18 = smov 256   ;;  %s455_s19 = smov 16  }
   0xe   :  { %35 = dma.hbm_to_vmem [thread:$0]  %s522_s1, 4096, %s30_s16, [#allocation6], %s454_s18, %s454_s18, %s455_s19  }
   0xf   :  { %s456_s22 = smov [#allocation2]   ;;  %s457_s24 = smov [#allocation7]  }
  0x10   :  { %s20_s23 = sshll.u32 %s456_s22, 4  ;;  %s41_s25 = sshll.u32 %s457_s24, 4  ;;  %s21_s23 = int_to_ptr.vmem [resolvable:$true] %s20_s23  ;;  %s42_s25 = int_to_ptr.vmem [resolvable:$true] %s41_s25 }
  0x11   :  { %s373_s26 = scalar_lea.vmem %s21_s23, 256  ;;  %p378_p6 = scmp.lt.s32.totalorder %s21_s23, %s21_s23 }
  0x12   :  { %p374_p5 = scmp.ne.s32.totalorder %s21_s23, %s373_s26  ;;  %p379_p7 = scmp.lt.s32.totalorder %s373_s26, %s373_s26 }
  0x14   :  { %p380_p8 = por %p379_p7, %p378_p6 }
  0x16   :  { %p381_p9 = pnand %p380_p8, %p374_p5 }
  0x18   :  { %384 = shalt.err (!%p381_p9)
}
  0x19   :  { %23 = dma.hbm_to_vmem [thread:$0]  %s521_s0, 256, %s21_s23, [#allocation3]  }
  0x1a   :  { %s393_s29 = scalar_lea.vmem %s42_s25, 2048  ;;  %p398_p11 = scmp.lt.s32.totalorder %s42_s25, %s42_s25 }
  0x1b   :  { %p394_p10 = scmp.ne.s32.totalorder %s42_s25, %s393_s29  ;;  %p399_p12 = scmp.lt.s32.totalorder %s393_s29, %s393_s29 }
  0x1d   :  { %p400_p13 = por %p399_p12, %p398_p11 }
  0x1f   :  { %p401_p0 = pnand %p400_p13, %p394_p10 }
  0x21   :  { %404 = shalt.err (!%p401_p0)
}
  0x22   :  { %s458_s1 = smov 128   ;;  %s459_s30 = smov 8  }
  0x23   :  { %47 = dma.hbm_to_vmem [thread:$0]  %s523_s2, 2048, %s42_s25, [#allocation6], %s458_s1, %s458_s1, %s459_s30  }
  0x24   :  { %445 = dma.done.wait [#allocation3], 256  }
  0x25   :  { %446 = vsyncadd [#allocation3], 4294967040 }
  0x26   :  { %447 = dma.done.wait [#allocation6], 6144  }
  0x27   :  { %448 = vsyncadd [#allocation6], 4294961152  ;;  %v460_v0 = vmov 0.0   ;;  %v90_v1 = vld [vmem:[#allocation5 + $0xf8] sm:$0xff]  ;;  %v89_v2 = vld [vmem:[#allocation5 + $0xf0] sm:$0xff]  ;;  %vm461_vm0 = vmmov 0  }
  0x28   :  { %297 = vmatprep.subr.mxu1 %v460_v0  ;;  %v88_v3 = vld [vmem:[#allocation5 + $0xe8] sm:$0xff]  ;;  %91 = vmatprep.subr.mxu0 %v90_v1  ;;  %v87_v4 = vld [vmem:[#allocation5 + $0xe0] sm:$0xff]  ;;  %v86_v5 = vld [vmem:[#allocation5 + $0xd8] sm:$0xff]  ;;  %s462_s0 = smov [#allocation9]  }
  0x29   :  { %92 = vmatpush1.xpose.msra.mxu0 %v89_v2  ;;  %v85_v6 = vld [vmem:[#allocation5 + $0xd0] sm:$0xff]  ;;  %v84_v7 = vld [vmem:[#allocation5 + $0xc8] sm:$0xff]  ;;  %v58_v8 = vld [vmem:[#allocation2 + $0x8] sm:$0xff]  ;;  %329 = vmatprep.mubr.msk.f32.mxu1 %vm461_vm0, %v460_v0  ;;  %s266_s2 = sshll.u32 %s462_s0, 4  ;;  %s267_s2 = int_to_ptr.vmem [resolvable:$true] %s266_s2 }
  0x2a   :  { %93 = vmatprep.subr.mxu0 %v88_v3  ;;  %v83_v9 = vld [vmem:[#allocation5 + $0xc0] sm:$0xff]  ;;  %155 = vmatprep.mubr.f32.mxu0 %v58_v8  ;;  %v178_v10 = vld [vmem:[#allocation7 + $0x78] sm:$0xff]  ;;  %v177_v12 = vld [vmem:[#allocation7 + $0x70] sm:$0xff]  ;;  %s405_s7 = scalar_lea.vmem %s267_s2, 128  ;;  %p410_p2 = scmp.lt.s32.totalorder %s267_s2, %s267_s2 }
  0x2b   :  { %v82_v11 = vld [vmem:[#allocation5 + $0xb8] sm:$0xff]  ;;  %298 = vmatpush3.xpose.msra.mxu1 %v178_v10  ;;  %v81_v13 = vld [vmem:[#allocation5 + $0xb0] sm:$0xff]  ;;  %v80_v14 = vld [vmem:[#allocation5 + $0xa8] sm:$0xff]  ;;  %p406_p1 = scmp.ne.s32.totalorder %s267_s2, %s405_s7  ;;  %p411_p3 = scmp.lt.s32.totalorder %s405_s7, %s405_s7 }
  0x2c   :  { %299 = vmatprep.subr.mxu1 %v460_v0  ;;  %v176_v15 = vld [vmem:[#allocation7 + $0x68] sm:$0xff]  ;;  %v79_v16 = vld [vmem:[#allocation5 + $0xa0] sm:$0xff]  ;;  %v78_v17 = vld [vmem:[#allocation5 + $0x98] sm:$0xff] }
  0x2d   :  { %94 = vmatpush1.xpose.msra.mxu0 %v87_v4  ;;  %v175_v18 = vld [vmem:[#allocation7 + $0x60] sm:$0xff]  ;;  %v77_v19 = vld [vmem:[#allocation5 + $0x90] sm:$0xff]  ;;  %v76_v20 = vld [vmem:[#allocation5 + $0x88] sm:$0xff]  ;;  %p412_p4 = por %p411_p3, %p410_p2 }
  0x2e   :  { %95 = vmatprep.subr.mxu0 %v86_v5  ;;  %v174_v21 = vld [vmem:[#allocation7 + $0x58] sm:$0xff]  ;;  %v75_v22 = vld [vmem:[#allocation5 + $0x80] sm:$0xff]  ;;  %v173_v24 = vld [vmem:[#allocation7 + $0x50] sm:$0xff] }
  0x2f   :  { %300 = vmatpush3.xpose.msra.mxu1 %v177_v12  ;;  %v74_v23 = vld [vmem:[#allocation5 + $0x78] sm:$0xff]  ;;  %v73_v25 = vld [vmem:[#allocation5 + $0x70] sm:$0xff]  ;;  %v72_v26 = vld [vmem:[#allocation5 + $0x68] sm:$0xff]  ;;  %p413_p5 = pnand %p412_p4, %p406_p1 }
  0x30   :  { %301 = vmatprep.subr.mxu1 %v460_v0  ;;  %v172_v27 = vld [vmem:[#allocation7 + $0x48] sm:$0xff]  ;;  %v71_v28 = vld [vmem:[#allocation5 + $0x60] sm:$0xff]  ;;  %v70_v29 = vld [vmem:[#allocation5 + $0x58] sm:$0xff] }
  0x31   :  { %96 = vmatpush1.xpose.msra.mxu0 %v85_v6  ;;  %v171_v30 = vld [vmem:[#allocation7 + $0x40] sm:$0xff]  ;;  %v69_v31 = vld [vmem:[#allocation5 + $0x50] sm:$0xff]  ;;  %v68_v32 = vld [vmem:[#allocation5 + $0x48] sm:$0xff] }
  0x32   :  { %97 = vmatprep.subr.mxu0 %v84_v7  ;;  %v170_v33 = vld [vmem:[#allocation7 + $0x38] sm:$0xff]  ;;  %v67_v34 = vld [vmem:[#allocation5 + $0x40] sm:$0xff]  ;;  %v169_v36 = vld [vmem:[#allocation7 + $0x30] sm:$0xff] }
  0x33   :  { %302 = vmatpush3.xpose.msra.mxu1 %v176_v15  ;;  %v66_v35 = vld [vmem:[#allocation5 + $0x38] sm:$0xff]  ;;  %v65_v37 = vld [vmem:[#allocation5 + $0x30] sm:$0xff]  ;;  %v64_v38 = vld [vmem:[#allocation5 + $0x28] sm:$0xff] }
  0x34   :  { %303 = vmatprep.subr.mxu1 %v460_v0  ;;  %v168_v39 = vld [vmem:[#allocation7 + $0x28] sm:$0xff]  ;;  %v63_v40 = vld [vmem:[#allocation5 + $0x20] sm:$0xff]  ;;  %v62_v41 = vld [vmem:[#allocation5 + $0x18] sm:$0xff] }
  0x35   :  { %98 = vmatpush1.xpose.msra.mxu0 %v83_v9  ;;  %v167_v42 = vld [vmem:[#allocation7 + $0x20] sm:$0xff]  ;;  %v61_v43 = vld [vmem:[#allocation5 + $0x10] sm:$0xff]  ;;  %v60_v44 = vld [vmem:[#allocation5 + $0x8] sm:$0xff] }
  0x36   :  { %99 = vmatprep.subr.mxu0 %v82_v11  ;;  %v59_v45 = vld [vmem:[#allocation5] sm:$0xff]  ;;  %v57_v46 = vld [vmem:[#allocation2] sm:$0xff]  ;;  %v166_v47 = vld [vmem:[#allocation7 + $0x18] sm:$0xff] }
  0x37   :  { %304 = vmatpush3.xpose.msra.mxu1 %v175_v18  ;;  %v165_v48 = vld [vmem:[#allocation7 + $0x10] sm:$0xff]  ;;  %v164_v49 = vld [vmem:[#allocation7 + $0x8] sm:$0xff]  ;;  %v163_v50 = vld [vmem:[#allocation7] sm:$0xff] }
  0x38   :  { %305 = vmatprep.subr.mxu1 %v460_v0 }
  0x39   :  { %100 = vmatpush1.xpose.msra.mxu0 %v81_v13 }
  0x3a   :  { %101 = vmatprep.subr.mxu0 %v80_v14 }
  0x3b   :  { %306 = vmatpush3.xpose.msra.mxu1 %v174_v21 }
  0x3c   :  { %307 = vmatprep.subr.mxu1 %v460_v0 }
  0x3d   :  { %102 = vmatpush1.xpose.msra.mxu0 %v79_v16 }
  0x3e   :  { %103 = vmatprep.subr.mxu0 %v78_v17 }
  0x3f   :  { %308 = vmatpush3.xpose.msra.mxu1 %v173_v24 }
  0x40   :  { %309 = vmatprep.subr.mxu1 %v460_v0 }
  0x41   :  { %104 = vmatpush1.xpose.msra.mxu0 %v77_v19 }
  0x42   :  { %105 = vmatprep.subr.mxu0 %v76_v20 }
  0x43   :  { %310 = vmatpush3.xpose.msra.mxu1 %v172_v27 }
  0x44   :  { %311 = vmatprep.subr.mxu1 %v460_v0 }
  0x45   :  { %106 = vmatpush1.xpose.msra.mxu0 %v75_v22 }
  0x46   :  { %107 = vmatprep.subr.mxu0 %v74_v23 }
  0x47   :  { %312 = vmatpush3.xpose.msra.mxu1 %v171_v30 }
  0x48   :  { %313 = vmatprep.subr.mxu1 %v460_v0 }
  0x49   :  { %108 = vmatpush1.xpose.msra.mxu0 %v73_v25 }
  0x4a   :  { %109 = vmatprep.subr.mxu0 %v72_v26 }
  0x4b   :  { %314 = vmatpush3.xpose.msra.mxu1 %v170_v33 }
  0x4c   :  { %315 = vmatprep.subr.mxu1 %v460_v0 }
  0x4d   :  { %110 = vmatpush1.xpose.msra.mxu0 %v71_v28 }
  0x4e   :  { %111 = vmatprep.subr.mxu0 %v70_v29 }
  0x4f   :  { %316 = vmatpush3.xpose.msra.mxu1 %v169_v36 }
  0x50   :  { %317 = vmatprep.subr.mxu1 %v460_v0 }
  0x51   :  { %112 = vmatpush1.xpose.msra.mxu0 %v69_v31 }
  0x52   :  { %113 = vmatprep.subr.mxu0 %v68_v32 }
  0x53   :  { %318 = vmatpush3.xpose.msra.mxu1 %v168_v39 }
  0x54   :  { %319 = vmatprep.subr.mxu1 %v460_v0 }
  0x55   :  { %114 = vmatpush1.xpose.msra.mxu0 %v67_v34 }
  0x56   :  { %115 = vmatprep.subr.mxu0 %v66_v35 }
  0x57   :  { %320 = vmatpush3.xpose.msra.mxu1 %v167_v42 }
  0x58   :  { %321 = vmatprep.subr.mxu1 %v460_v0 }
  0x59   :  { %116 = vmatpush1.xpose.msra.mxu0 %v65_v37 }
  0x5a   :  { %117 = vmatprep.subr.mxu0 %v64_v38 }
  0x5b   :  { %322 = vmatpush3.xpose.msra.mxu1 %v166_v47 }
  0x5c   :  { %323 = vmatprep.subr.mxu1 %v460_v0 }
  0x5d   :  { %118 = vmatpush1.xpose.msra.mxu0 %v63_v40 }
  0x5e   :  { %119 = vmatprep.subr.mxu0 %v62_v41 }
  0x5f   :  { %324 = vmatpush3.xpose.msra.mxu1 %v165_v48 }
  0x60   :  { %325 = vmatprep.subr.mxu1 %v460_v0 }
  0x61   :  { %120 = vmatpush1.xpose.msra.mxu0 %v61_v43 }
  0x62   :  { %121 = vmatprep.subr.mxu0 %v60_v44 }
  0x63   :  { %326 = vmatpush3.xpose.msra.mxu1 %v164_v49 }
  0x64   :  { %327 = vmatprep.subr.mxu1 %v460_v0 }
  0x65   :  { %122 = vmatpush1.xpose.msra.mxu0 %v59_v45 }
  0x67   :  { %328 = vmatpush3.xpose.msra.mxu1 %v163_v50 }
  0x68   :  { %156 = vmatmul.mubr.f32.vlgmr.msra.gmra.mxu0 %v57_v46 }
 0x128   :  { %v157_v51 = vpop.f32.mrf.mxu0 }
 0x129   :  { %343 = vtanh.f32 %v157_v51 }
 0x12a   :  { %v159_v52 = vpop.f32.mrf.mxu0 }
 0x136   :  { %v344_v53 = vpop.eup %343 }
 0x137   :  { %162 = vst [vmem:[#allocation9] sm:$0xff] %v344_v53  ;;  %330 = vmatmul.mubr.f32.vlgmr.msra.gmra.mxu1 %v344_v53 }
 0x138   :  { %416 = shalt.err (!%p413_p5)
}
 0x139   :  { %269 = dma.vmem_to_hbm [thread:$0]  %s267_s2, 128, %s525_s4, [#allocation10]  }
 0x13a   :  { %s463_s10 = smov [#allocation8]  }
 0x13b   :  { %s256_s11 = sshll.u32 %s463_s10, 4  ;;  %s257_s11 = int_to_ptr.vmem [resolvable:$true] %s256_s11 }
 0x13c   :  { %s425_s12 = scalar_lea.vmem %s257_s11, 128  ;;  %p430_p7 = scmp.lt.s32.totalorder %s257_s11, %s257_s11 }
 0x13d   :  { %p426_p6 = scmp.ne.s32.totalorder %s257_s11, %s425_s12  ;;  %p431_p8 = scmp.lt.s32.totalorder %s425_s12, %s425_s12 }
 0x13f   :  { %p432_p9 = por %p431_p8, %p430_p7 }
 0x141   :  { %p433_p10 = pnand %p432_p9, %p426_p6 }
 0x1f7   :  { %v245_v54 = vpop.f32.mrf.mxu1 }
 0x1f8   :  { %249 = vst [vmem:[#allocation8] sm:$0xff] %v245_v54 }
 0x1f9   :  { %v331_v55 = vpop.f32.mrf.mxu1 }
 0x1fa   :  { %436 = shalt.err (!%p433_p10)
}
 0x1fb   :  { %259 = dma.vmem_to_hbm [thread:$0]  %s257_s11, 128, %s524_s3, [#allocation4]  }
 0x1fc   :  { %449 = dma.done.wait [#allocation4], 128  }
 0x1fd   :  { %450 = vsyncadd [#allocation4], 4294967168 }
 0x1fe   :  { %451 = dma.done.wait [#allocation10], 128  }
 0x1ff   :  { %452 = vsyncadd [#allocation10], 4294967168 }
 0x200   :  { %276 = vsyncpa [#allocation3], 1 }
 0x201   :  { %277 = vsyncpa [#allocation6], 1 }
 0x202   :  { %278 = vsyncpa [#allocation4], 1 }
 0x203   :  { %279 = vsyncpa [#allocation10], 1 }

</bundles_post_ra>
